<compile_context>
chip_gen: v7x
topology: tpu7x:2x2x1
jax: 0.10.0
libtpu: 0.0.40
codegen_flags: <defaults>
</compile_context>

<pallas_src>
import functools
import math

import jax
import jax.numpy as jnp
from jax import lax
from jax.experimental import pallas as pl
from jax.experimental.pallas import tpu as pltpu


def _gelu_conv_block_kernel(x_ref, w_ref, bias_ref, gamma_ref, beta_ref,
                            o_ref, xbig_ref, *, H: int, W: int,
                            num_groups: int, eps: float,
                            approximate_gelu: bool):
    # x_ref     : (1, Cin, H*W)      channels on sublanes, flat spatial on lanes
    # w_ref     : (9, Cout, Cin)     tap-major conv weights (index = dy*3 + dx)
    # bias_ref  : (Cout, 1)          conv bias
    # gamma_ref : (Cout, 1)          GroupNorm scale
    # beta_ref  : (Cout, 1)          GroupNorm shift
    # o_ref     : (1, Cout, H*W)     lane-dense output (== NCHW after reshape)
    # xbig_ref  : (Cin, H*W + 2*OFF) VMEM scratch: zero-padded flat input
    HW = H * W
    Cin = x_ref.shape[1]
    Cout = o_ref.shape[1]
    Cpg = Cout // num_groups
    OFF = ((W + 1 + 127) // 128) * 128      # lane-tile-aligned halo width
    cdt = xbig_ref.dtype

    # ---- zero halos + stage interior (all stores 128-lane aligned) ----
    # Not guarded by program_id==0 on purpose (per-core scratch, see header).
    xbig_ref[:, :OFF] = jnp.zeros((Cin, OFF), cdt)
    xbig_ref[:, OFF + HW:] = jnp.zeros((Cin, OFF), cdt)
    # TODO(synk): DMA x straight from HBM into xbig_ref[:, OFF:OFF+HW]
    # (memory_space=pl.ANY + pltpu.make_async_copy, double-buffered) to drop
    # this VMEM->VMEM copy and the pipelined x block.
    xbig_ref[:, OFF:OFF + HW] = x_ref[0]

    # ---- horizontal-wrap masks, built in-kernel (no captured constants) ----
    col = lax.broadcasted_iota(jnp.int32, (1, HW), 1) % W
    mask_l = jnp.broadcast_to((col != 0).astype(cdt), (Cin, HW))      # w == 0
    mask_r = jnp.broadcast_to((col != W - 1).astype(cdt), (Cin, HW))  # w == W-1

    # ---- 3x3 conv as 9 accumulated MXU dots (f32 accumulation) ----
    acc = jnp.zeros((Cout, HW), jnp.float32)
    for dy in range(3):
        for dx in range(3):
            s = OFF + (dy - 1) * W + (dx - 1)       # static lane offset
            tap = xbig_ref[:, s:s + HW]             # (Cin, HW) ref-slice load
            if dx == 0:
                tap = tap * mask_l                  # left column wrapped -> 0
            elif dx == 2:
                tap = tap * mask_r                  # right column wrapped -> 0
            acc = acc + jnp.dot(w_ref[dy * 3 + dx], tap,
                                preferred_element_type=jnp.float32)
    acc = acc + bias_ref[...].astype(jnp.float32)   # (Cout, 1) broadcast add

    # ---- GroupNorm: two-pass centered statistics in f32 ----
    gamma = gamma_ref[...].astype(jnp.float32)      # (Cout, 1)
    beta = beta_ref[...].astype(jnp.float32)
    inv_n = 1.0 / float(Cpg * HW)

    row_sum = jnp.sum(acc, axis=1, keepdims=True)               # (Cout, 1)
    mean_c = jnp.concatenate(
        [jnp.broadcast_to(
            jnp.sum(row_sum[g * Cpg:(g + 1) * Cpg], axis=0, keepdims=True)
            * inv_n, (Cpg, 1))
         for g in range(num_groups)], axis=0)                   # (Cout, 1)

    xc = acc - mean_c                                           # centered
    row_ss = jnp.sum(xc * xc, axis=1, keepdims=True)            # (Cout, 1)
    rstd_c = jnp.concatenate(
        [jnp.broadcast_to(
            lax.rsqrt(jnp.sum(row_ss[g * Cpg:(g + 1) * Cpg], axis=0,
                              keepdims=True) * inv_n + eps), (Cpg, 1))
         for g in range(num_groups)], axis=0)                   # (Cout, 1)

    y = xc * (rstd_c * gamma) + beta

    # ---- GELU ----
    if approximate_gelu:
        # tanh form: moves the transcendental onto the EUP slot (optional).
        c = math.sqrt(2.0 / math.pi)
        y = 0.5 * y * (1.0 + jnp.tanh(c * (y + 0.044715 * y * y * y)))
    else:
        # exact erf form (PyTorch nn.GELU default, approximate='none').
        y = 0.5 * y * (1.0 + lax.erf(y * (1.0 / math.sqrt(2.0))))

    o_ref[0] = y.astype(o_ref.dtype)                # single aligned full store


def gelu_conv_block(x_nchw, weight_oihw, bias, gamma, beta, *,
                    num_groups: int, eps: float = 1e-5,
                    compute_dtype=jnp.float32, approximate_gelu: bool = False):
    """GELUConvBlock forward. NCHW in / NCHW out, like the PyTorch module."""
    N, Cin, H, W = x_nchw.shape
    Cout = weight_oihw.shape[0]
    assert Cout % num_groups == 0, "out_ch must be divisible by num_groups"
    assert H >= 2 and W >= 2, "mask/halo logic assumes H, W >= 2"
    HW = H * W
    OFF = ((W + 1 + 127) // 128) * 128

    # Free layout change only: pure reshape, no transpose/pad of activations.
    x_flat = x_nchw.reshape(N, Cin, HW).astype(compute_dtype)

    # Parameters: tiny one-time reshuffle at trace time.
    # (Cout, Cin, 3, 3) -> (3, 3, Cout, Cin) -> (9, Cout, Cin), tap-major.
    w_taps = jnp.transpose(weight_oihw, (2, 3, 0, 1)).reshape(9, Cout, Cin)
    w_taps = w_taps.astype(compute_dtype)
    b2 = bias.reshape(Cout, 1).astype(jnp.float32)
    g2 = gamma.reshape(Cout, 1).astype(jnp.float32)
    be2 = beta.reshape(Cout, 1).astype(jnp.float32)

    kernel = functools.partial(_gelu_conv_block_kernel, H=H, W=W,
                               num_groups=num_groups, eps=eps,
                               approximate_gelu=approximate_gelu)

    # Explicit VMEM budget for the per-step resident set (review item 4).
    csz = jnp.dtype(compute_dtype).itemsize
    est = (2 * Cin * HW * csz                 # x block (double-buffered)
           + 2 * Cout * HW * 4                # out block (double-buffered)
           + 9 * Cout * Cin * csz             # conv weights
           + 3 * Cout * 4                     # bias / gamma / beta
           + Cin * (HW + 2 * OFF) * csz       # padded scratch
           + (Cout + Cin) * HW * 4)           # acc + tap working set
    vmem_limit = int(min(max(2 * est, 4 << 20), 64 << 20))

    # TODO(synk): for large H*W or Cout, tile H*W across the grid with carried
    # per-(image, group) partial sums (two-phase normalize) and/or tile Cout;
    # for tiny Cout, fold all N images onto the lane axis of one step to raise
    # MXU occupancy.
    out_flat = pl.pallas_call(
        kernel,
        out_shape=jax.ShapeDtypeStruct((N, Cout, HW), jnp.float32),
        grid_spec=pltpu.PrefetchScalarGridSpec(
            num_scalar_prefetch=0,
            grid=(N,),                        # one image per grid step
            in_specs=[
                pl.BlockSpec((1, Cin, HW), lambda n: (n, 0, 0)),
                pl.BlockSpec((9, Cout, Cin), lambda n: (0, 0, 0)),
                pl.BlockSpec((Cout, 1), lambda n: (0, 0)),
                pl.BlockSpec((Cout, 1), lambda n: (0, 0)),
                pl.BlockSpec((Cout, 1), lambda n: (0, 0)),
            ],
            out_specs=pl.BlockSpec((1, Cout, HW), lambda n: (n, 0, 0)),
            scratch_shapes=[pltpu.VMEM((Cin, HW + 2 * OFF), compute_dtype)],
        ),
        compiler_params=pltpu.CompilerParams(
            dimension_semantics=("parallel",),
            vmem_limit_bytes=vmem_limit),
    )(x_flat, w_taps, b2, g2, be2)

    # Output is already channels-first; reshaping back to NCHW is free.
    return out_flat.reshape(N, Cout, H, W)


def _reference_forward(x, w, b, gamma, beta, num_groups, eps=1e-5):
    y = jax.lax.conv_general_dilated(
        x, w, window_strides=(1, 1), padding=((1, 1), (1, 1)),
        dimension_numbers=("NCHW", "OIHW", "NCHW"))
    y = y + b[None, :, None, None]
    N, C, H, W = y.shape
    yg = y.reshape(N, num_groups, C // num_groups, H, W)
    mean = yg.mean(axis=(2, 3, 4), keepdims=True)
    var = yg.var(axis=(2, 3, 4), keepdims=True)
    yn = ((yg - mean) * jax.lax.rsqrt(var + eps)).reshape(N, C, H, W)
    yn = yn * gamma[None, :, None, None] + beta[None, :, None, None]
    return jax.nn.gelu(yn, approximate=False)


if __name__ == "__main__":
    # Module config: GELUConvBlock(in_ch=4, out_ch=8, group_size=2)
    N, in_ch, out_ch, group_size, H, W = 2, 4, 8, 2, 16, 16

    key = jax.random.PRNGKey(0)
    kx, kw, kb = jax.random.split(key, 3)
    x = jax.random.normal(kx, (N, in_ch, H, W), jnp.float32)

    # Deterministic synthetic parameters (Conv2d weight OIHW + bias; GN affine).
    fan_in = in_ch * 3 * 3
    bound = 1.0 / math.sqrt(fan_in)
    weight = jax.random.uniform(kw, (out_ch, in_ch, 3, 3), jnp.float32,
                                minval=-bound, maxval=bound)
    bias = jax.random.uniform(kb, (out_ch,), jnp.float32,
                              minval=-bound, maxval=bound)
    gamma = jnp.ones((out_ch,), jnp.float32)   # GroupNorm weight init
    beta = jnp.zeros((out_ch,), jnp.float32)   # GroupNorm bias init

    ref = _reference_forward(x, weight, bias, gamma, beta, group_size)

    # f32 path: tight check against the f32 reference.
    out = gelu_conv_block(x, weight, bias, gamma, beta, num_groups=group_size)
    out = jax.block_until_ready(out)
    assert out.shape == (N, out_ch, H, W), out.shape
    assert jnp.allclose(out, ref, rtol=1e-4, atol=1e-4), \
        float(jnp.max(jnp.abs(out - ref)))

    # bf16 matmul-operand path (perf option): looser tolerance.
    out_bf16 = gelu_conv_block(x, weight, bias, gamma, beta,
                               num_groups=group_size,
                               compute_dtype=jnp.bfloat16)
    out_bf16 = jax.block_until_ready(out_bf16)
    assert jnp.allclose(out_bf16, ref, rtol=5e-2, atol=5e-2), \
        float(jnp.max(jnp.abs(out_bf16 - ref)))

    print("KERNEL_OK")
</pallas_src>

<mosaic_0001>
module attributes {stable_mosaic.version = 11 : i64} {
  func.func @_gelu_conv_block_kernel(%arg0: i32, %arg1: memref<1x4x256xf32, #tpu.memory_space<vmem>>, %arg2: memref<9x8x4xf32, #tpu.memory_space<vmem>>, %arg3: memref<8x1xf32, #tpu.memory_space<vmem>>, %arg4: memref<8x1xf32, #tpu.memory_space<vmem>>, %arg5: memref<8x1xf32, #tpu.memory_space<vmem>>, %arg6: memref<1x8x256xf32, #tpu.memory_space<vmem>>, %arg7: memref<4x512xf32, #tpu.memory_space<vmem>>) attributes {dimension_semantics = [#tpu.dimension_semantics<parallel>], iteration_bounds = array<i64: 2>, scalar_prefetch = 0 : i64, scratch_operands = 1 : i64, tpu.core_type = #tpu.core_type<tc>, window_params = [{transform_indices = @transform_0, window_bounds = array<i64: 1, 4, 256>}, {pipeline_mode = #tpu.pipeline_mode<synchronous>, transform_indices = @transform_1, window_bounds = array<i64: 9, 8, 4>}, {pipeline_mode = #tpu.pipeline_mode<synchronous>, transform_indices = @transform_2, window_bounds = array<i64: 8, 1>}, {pipeline_mode = #tpu.pipeline_mode<synchronous>, transform_indices = @transform_3, window_bounds = array<i64: 8, 1>}, {pipeline_mode = #tpu.pipeline_mode<synchronous>, transform_indices = @transform_4, window_bounds = array<i64: 8, 1>}, {transform_indices = @transform_5, window_bounds = array<i64: 1, 8, 256>}]} {
    %cst = arith.constant 0.000000e+00 : f32
    %0 = vector.broadcast %cst : f32 to vector<4x128xf32>
    %c0 = arith.constant 0 : index
    %c0_0 = arith.constant 0 : index
    %1 = vector.load %arg7[%c0, %c0_0] : memref<4x512xf32, #tpu.memory_space<vmem>>, vector<4x128xf32>
    tpu.vector_store %arg7[%c0, %c0_0], %0 {strides = array<i32>} : memref<4x512xf32, #tpu.memory_space<vmem>>, vector<4x128xf32>,
    %cst_1 = arith.constant 0.000000e+00 : f32
    %2 = vector.broadcast %cst_1 : f32 to vector<4x128xf32>
    %c0_2 = arith.constant 0 : index
    %c384 = arith.constant 384 : index
    %3 = vector.load %arg7[%c0_2, %c384] : memref<4x512xf32, #tpu.memory_space<vmem>>, vector<4x128xf32>
    tpu.vector_store %arg7[%c0_2, %c384], %2 {strides = array<i32>} : memref<4x512xf32, #tpu.memory_space<vmem>>, vector<4x128xf32>,
    %c0_3 = arith.constant 0 : index
    %c0_4 = arith.constant 0 : index
    %c0_5 = arith.constant 0 : index
    %4 = vector.load %arg1[%c0_3, %c0_4, %c0_5] : memref<1x4x256xf32, #tpu.memory_space<vmem>>, vector<1x4x256xf32>
    %5 = vector.shape_cast %4 : vector<1x4x256xf32> to vector<4x256xf32>
    %c0_6 = arith.constant 0 : index
    %c128 = arith.constant 128 : index
    %6 = vector.load %arg7[%c0_6, %c128] : memref<4x512xf32, #tpu.memory_space<vmem>>, vector<4x256xf32>
    tpu.vector_store %arg7[%c0_6, %c128], %5 {strides = array<i32>} : memref<4x512xf32, #tpu.memory_space<vmem>>, vector<4x256xf32>,
    %7 = tpu.iota {dimensions = array<i32: 1>} : vector<1x256xi32>
    %c16_i32 = arith.constant 16 : i32
    %c0_i32 = arith.constant 0 : i32
    %8 = arith.cmpi eq, %c16_i32, %c0_i32 : i32
    %c1_i32 = arith.constant 1 : i32
    %9 = arith.select %8, %c1_i32, %c16_i32 : i32
    %10 = vector.broadcast %9 : i32 to vector<1x256xi32>
    %11 = arith.remsi %7, %10 : vector<1x256xi32>
    %c0_i32_7 = arith.constant 0 : i32
    %12 = vector.broadcast %c0_i32_7 : i32 to vector<1x256xi32>
    %13 = arith.cmpi ne, %11, %12 : vector<1x256xi32>
    %c0_i32_8 = arith.constant 0 : i32
    %14 = vector.broadcast %c0_i32_8 : i32 to vector<1x256xi32>
    %15 = arith.cmpi slt, %11, %14 : vector<1x256xi32>
    %c0_i32_9 = arith.constant 0 : i32
    %16 = arith.cmpi slt, %9, %c0_i32_9 : i32
    %17 = vector.broadcast %16 : i1 to vector<1x256xi1>
    %18 = vector.broadcast %17 : vector<1x256xi1> to vector<1x256xi1>
    %19 = arith.xori %15, %18 : vector<1x256xi1>
    %20 = arith.andi %19, %13 : vector<1x256xi1>
    %21 = vector.broadcast %9 : i32 to vector<1x256xi32>
    %22 = arith.addi %11, %21 : vector<1x256xi32>
    %23 = arith.select %20, %22, %11 : vector<1x256xi1>, vector<1x256xi32>
    %c0_i32_10 = arith.constant 0 : i32
    %24 = vector.broadcast %c0_i32_10 : i32 to vector<1x256xi32>
    %25 = arith.cmpi ne, %23, %24 : vector<1x256xi32>
    %26 = arith.extui %25 : vector<1x256xi1> to vector<1x256xi32>
    %27 = arith.sitofp %26 : vector<1x256xi32> to vector<1x256xf32>
    %28 = vector.shape_cast %27 : vector<1x256xf32> to vector<1x256xf32>
    %29 = vector.broadcast %28 : vector<1x256xf32> to vector<4x256xf32>
    %c15_i32 = arith.constant 15 : i32
    %30 = vector.broadcast %c15_i32 : i32 to vector<1x256xi32>
    %31 = arith.cmpi ne, %23, %30 : vector<1x256xi32>
    %32 = arith.extui %31 : vector<1x256xi1> to vector<1x256xi32>
    %33 = arith.sitofp %32 : vector<1x256xi32> to vector<1x256xf32>
    %34 = vector.shape_cast %33 : vector<1x256xf32> to vector<1x256xf32>
    %35 = vector.broadcast %34 : vector<1x256xf32> to vector<4x256xf32>
    %cst_11 = arith.constant 0.000000e+00 : f32
    %36 = vector.broadcast %cst_11 : f32 to vector<8x256xf32>
    %c0_12 = arith.constant 0 : index
    %c111 = arith.constant 111 : index
    %37 = vector.load %arg7[%c0_12, %c111] : memref<4x512xf32, #tpu.memory_space<vmem>>, vector<4x256xf32>
    %38 = arith.mulf %37, %29 : vector<4x256xf32>
    %c0_13 = arith.constant 0 : index
    %c0_14 = arith.constant 0 : index
    %c0_15 = arith.constant 0 : index
    %39 = vector.load %arg2[%c0_13, %c0_14, %c0_15] : memref<9x8x4xf32, #tpu.memory_space<vmem>>, vector<1x8x4xf32>
    %40 = vector.shape_cast %39 : vector<1x8x4xf32> to vector<8x4xf32>
    %cst_16 = arith.constant dense<0.000000e+00> : vector<8x256xf32>
    %41 = tpu.matmul %40, %38, %cst_16 {dimension_numbers = #tpu.dot_dimension_numbers<[1], [0], [0], [1], [0, 0, 1, 1], [], []>} : vector<8x4xf32>, vector<4x256xf32>, vector<8x256xf32> -> vector<8x256xf32>
    %42 = arith.addf %36, %41 : vector<8x256xf32>
    %c0_17 = arith.constant 0 : index
    %c112 = arith.constant 112 : index
    %43 = vector.load %arg7[%c0_17, %c112] : memref<4x512xf32, #tpu.memory_space<vmem>>, vector<4x256xf32>
    %c1 = arith.constant 1 : index
    %c0_18 = arith.constant 0 : index
    %c0_19 = arith.constant 0 : index
    %44 = vector.load %arg2[%c1, %c0_18, %c0_19] : memref<9x8x4xf32, #tpu.memory_space<vmem>>, vector<1x8x4xf32>
    %45 = vector.shape_cast %44 : vector<1x8x4xf32> to vector<8x4xf32>
    %cst_20 = arith.constant dense<0.000000e+00> : vector<8x256xf32>
    %46 = tpu.matmul %45, %43, %cst_20 {dimension_numbers = #tpu.dot_dimension_numbers<[1], [0], [0], [1], [0, 0, 1, 1], [], []>} : vector<8x4xf32>, vector<4x256xf32>, vector<8x256xf32> -> vector<8x256xf32>
    %47 = arith.addf %42, %46 : vector<8x256xf32>
    %c0_21 = arith.constant 0 : index
    %c113 = arith.constant 113 : index
    %48 = vector.load %arg7[%c0_21, %c113] : memref<4x512xf32, #tpu.memory_space<vmem>>, vector<4x256xf32>
    %49 = arith.mulf %48, %35 : vector<4x256xf32>
    %c2 = arith.constant 2 : index
    %c0_22 = arith.constant 0 : index
    %c0_23 = arith.constant 0 : index
    %50 = vector.load %arg2[%c2, %c0_22, %c0_23] : memref<9x8x4xf32, #tpu.memory_space<vmem>>, vector<1x8x4xf32>
    %51 = vector.shape_cast %50 : vector<1x8x4xf32> to vector<8x4xf32>
    %cst_24 = arith.constant dense<0.000000e+00> : vector<8x256xf32>
    %52 = tpu.matmul %51, %49, %cst_24 {dimension_numbers = #tpu.dot_dimension_numbers<[1], [0], [0], [1], [0, 0, 1, 1], [], []>} : vector<8x4xf32>, vector<4x256xf32>, vector<8x256xf32> -> vector<8x256xf32>
    %53 = arith.addf %47, %52 : vector<8x256xf32>
    %c0_25 = arith.constant 0 : index
    %c127 = arith.constant 127 : index
    %54 = vector.load %arg7[%c0_25, %c127] : memref<4x512xf32, #tpu.memory_space<vmem>>, vector<4x256xf32>
    %55 = arith.mulf %54, %29 : vector<4x256xf32>
    %c3 = arith.constant 3 : index
    %c0_26 = arith.constant 0 : index
    %c0_27 = arith.constant 0 : index
    %56 = vector.load %arg2[%c3, %c0_26, %c0_27] : memref<9x8x4xf32, #tpu.memory_space<vmem>>, vector<1x8x4xf32>
    %57 = vector.shape_cast %56 : vector<1x8x4xf32> to vector<8x4xf32>
    %cst_28 = arith.constant dense<0.000000e+00> : vector<8x256xf32>
    %58 = tpu.matmul %57, %55, %cst_28 {dimension_numbers = #tpu.dot_dimension_numbers<[1], [0], [0], [1], [0, 0, 1, 1], [], []>} : vector<8x4xf32>, vector<4x256xf32>, vector<8x256xf32> -> vector<8x256xf32>
    %59 = arith.addf %53, %58 : vector<8x256xf32>
    %c0_29 = arith.constant 0 : index
    %c128_30 = arith.constant 128 : index
    %60 = vector.load %arg7[%c0_29, %c128_30] : memref<4x512xf32, #tpu.memory_space<vmem>>, vector<4x256xf32>
    %c4 = arith.constant 4 : index
    %c0_31 = arith.constant 0 : index
    %c0_32 = arith.constant 0 : index
    %61 = vector.load %arg2[%c4, %c0_31, %c0_32] : memref<9x8x4xf32, #tpu.memory_space<vmem>>, vector<1x8x4xf32>
    %62 = vector.shape_cast %61 : vector<1x8x4xf32> to vector<8x4xf32>
    %cst_33 = arith.constant dense<0.000000e+00> : vector<8x256xf32>
    %63 = tpu.matmul %62, %60, %cst_33 {dimension_numbers = #tpu.dot_dimension_numbers<[1], [0], [0], [1], [0, 0, 1, 1], [], []>} : vector<8x4xf32>, vector<4x256xf32>, vector<8x256xf32> -> vector<8x256xf32>
    %64 = arith.addf %59, %63 : vector<8x256xf32>
    %c0_34 = arith.constant 0 : index
    %c129 = arith.constant 129 : index
    %65 = vector.load %arg7[%c0_34, %c129] : memref<4x512xf32, #tpu.memory_space<vmem>>, vector<4x256xf32>
    %66 = arith.mulf %65, %35 : vector<4x256xf32>
    %c5 = arith.constant 5 : index
    %c0_35 = arith.constant 0 : index
    %c0_36 = arith.constant 0 : index
    %67 = vector.load %arg2[%c5, %c0_35, %c0_36] : memref<9x8x4xf32, #tpu.memory_space<vmem>>, vector<1x8x4xf32>
    %68 = vector.shape_cast %67 : vector<1x8x4xf32> to vector<8x4xf32>
    %cst_37 = arith.constant dense<0.000000e+00> : vector<8x256xf32>
    %69 = tpu.matmul %68, %66, %cst_37 {dimension_numbers = #tpu.dot_dimension_numbers<[1], [0], [0], [1], [0, 0, 1, 1], [], []>} : vector<8x4xf32>, vector<4x256xf32>, vector<8x256xf32> -> vector<8x256xf32>
    %70 = arith.addf %64, %69 : vector<8x256xf32>
    %c0_38 = arith.constant 0 : index
    %c143 = arith.constant 143 : index
    %71 = vector.load %arg7[%c0_38, %c143] : memref<4x512xf32, #tpu.memory_space<vmem>>, vector<4x256xf32>
    %72 = arith.mulf %71, %29 : vector<4x256xf32>
    %c6 = arith.constant 6 : index
    %c0_39 = arith.constant 0 : index
    %c0_40 = arith.constant 0 : index
    %73 = vector.load %arg2[%c6, %c0_39, %c0_40] : memref<9x8x4xf32, #tpu.memory_space<vmem>>, vector<1x8x4xf32>
    %74 = vector.shape_cast %73 : vector<1x8x4xf32> to vector<8x4xf32>
    %cst_41 = arith.constant dense<0.000000e+00> : vector<8x256xf32>
    %75 = tpu.matmul %74, %72, %cst_41 {dimension_numbers = #tpu.dot_dimension_numbers<[1], [0], [0], [1], [0, 0, 1, 1], [], []>} : vector<8x4xf32>, vector<4x256xf32>, vector<8x256xf32> -> vector<8x256xf32>
    %76 = arith.addf %70, %75 : vector<8x256xf32>
    %c0_42 = arith.constant 0 : index
    %c144 = arith.constant 144 : index
    %77 = vector.load %arg7[%c0_42, %c144] : memref<4x512xf32, #tpu.memory_space<vmem>>, vector<4x256xf32>
    %c7 = arith.constant 7 : index
    %c0_43 = arith.constant 0 : index
    %c0_44 = arith.constant 0 : index
    %78 = vector.load %arg2[%c7, %c0_43, %c0_44] : memref<9x8x4xf32, #tpu.memory_space<vmem>>, vector<1x8x4xf32>
    %79 = vector.shape_cast %78 : vector<1x8x4xf32> to vector<8x4xf32>
    %cst_45 = arith.constant dense<0.000000e+00> : vector<8x256xf32>
    %80 = tpu.matmul %79, %77, %cst_45 {dimension_numbers = #tpu.dot_dimension_numbers<[1], [0], [0], [1], [0, 0, 1, 1], [], []>} : vector<8x4xf32>, vector<4x256xf32>, vector<8x256xf32> -> vector<8x256xf32>
    %81 = arith.addf %76, %80 : vector<8x256xf32>
    %c0_46 = arith.constant 0 : index
    %c145 = arith.constant 145 : index
    %82 = vector.load %arg7[%c0_46, %c145] : memref<4x512xf32, #tpu.memory_space<vmem>>, vector<4x256xf32>
    %83 = arith.mulf %82, %35 : vector<4x256xf32>
    %c8 = arith.constant 8 : index
    %c0_47 = arith.constant 0 : index
    %c0_48 = arith.constant 0 : index
    %84 = vector.load %arg2[%c8, %c0_47, %c0_48] : memref<9x8x4xf32, #tpu.memory_space<vmem>>, vector<1x8x4xf32>
    %85 = vector.shape_cast %84 : vector<1x8x4xf32> to vector<8x4xf32>
    %cst_49 = arith.constant dense<0.000000e+00> : vector<8x256xf32>
    %86 = tpu.matmul %85, %83, %cst_49 {dimension_numbers = #tpu.dot_dimension_numbers<[1], [0], [0], [1], [0, 0, 1, 1], [], []>} : vector<8x4xf32>, vector<4x256xf32>, vector<8x256xf32> -> vector<8x256xf32>
    %87 = arith.addf %81, %86 : vector<8x256xf32>
    %c0_50 = arith.constant 0 : index
    %c0_51 = arith.constant 0 : index
    %88 = vector.load %arg3[%c0_50, %c0_51] : memref<8x1xf32, #tpu.memory_space<vmem>>, vector<8x1xf32>
    %89 = vector.broadcast %88 : vector<8x1xf32> to vector<8x256xf32>
    %90 = arith.addf %87, %89 : vector<8x256xf32>
    %c0_52 = arith.constant 0 : index
    %c0_53 = arith.constant 0 : index
    %91 = vector.load %arg4[%c0_52, %c0_53] : memref<8x1xf32, #tpu.memory_space<vmem>>, vector<8x1xf32>
    %c0_54 = arith.constant 0 : index
    %c0_55 = arith.constant 0 : index
    %92 = vector.load %arg5[%c0_54, %c0_55] : memref<8x1xf32, #tpu.memory_space<vmem>>, vector<8x1xf32>
    %cst_56 = arith.constant dense<0.000000e+00> : vector<8xf32>
    %93 = vector.multi_reduction <add>, %90, %cst_56 [1] : vector<8x256xf32> to vector<8xf32>
    %94 = vector.shape_cast %93 : vector<8xf32> to vector<8x1xf32>
    %95 = vector.extract_strided_slice %94 {offsets = [0, 0], sizes = [4, 1], strides = [1, 1]} : vector<8x1xf32> to vector<4x1xf32>
    %cst_57 = arith.constant dense<0.000000e+00> : vector<1xf32>
    %96 = vector.multi_reduction <add>, %95, %cst_57 [0] : vector<4x1xf32> to vector<1xf32>
    %97 = vector.shape_cast %96 : vector<1xf32> to vector<1x1xf32>
    %cst_58 = arith.constant 9.765625E-4 : f32
    %98 = vector.broadcast %cst_58 : f32 to vector<1x1xf32>
    %99 = arith.mulf %97, %98 : vector<1x1xf32>
    %100 = vector.shape_cast %99 : vector<1x1xf32> to vector<1x1xf32>
    %101 = vector.broadcast %100 : vector<1x1xf32> to vector<4x1xf32>
    %102 = vector.extract_strided_slice %94 {offsets = [4, 0], sizes = [4, 1], strides = [1, 1]} : vector<8x1xf32> to vector<4x1xf32>
    %cst_59 = arith.constant dense<0.000000e+00> : vector<1xf32>
    %103 = vector.multi_reduction <add>, %102, %cst_59 [0] : vector<4x1xf32> to vector<1xf32>
    %104 = vector.shape_cast %103 : vector<1xf32> to vector<1x1xf32>
    %cst_60 = arith.constant 9.765625E-4 : f32
    %105 = vector.broadcast %cst_60 : f32 to vector<1x1xf32>
    %106 = arith.mulf %104, %105 : vector<1x1xf32>
    %107 = vector.shape_cast %106 : vector<1x1xf32> to vector<1x1xf32>
    %108 = vector.broadcast %107 : vector<1x1xf32> to vector<4x1xf32>
    %109 = tpu.concatenate %101, %108 in 0 : vector<4x1xf32>, vector<4x1xf32> -> vector<8x1xf32>
    %110 = vector.broadcast %109 : vector<8x1xf32> to vector<8x256xf32>
    %111 = arith.subf %90, %110 : vector<8x256xf32>
    %112 = arith.mulf %111, %111 : vector<8x256xf32>
    %cst_61 = arith.constant dense<0.000000e+00> : vector<8xf32>
    %113 = vector.multi_reduction <add>, %112, %cst_61 [1] : vector<8x256xf32> to vector<8xf32>
    %114 = vector.shape_cast %113 : vector<8xf32> to vector<8x1xf32>
    %115 = vector.extract_strided_slice %114 {offsets = [0, 0], sizes = [4, 1], strides = [1, 1]} : vector<8x1xf32> to vector<4x1xf32>
    %cst_62 = arith.constant dense<0.000000e+00> : vector<1xf32>
    %116 = vector.multi_reduction <add>, %115, %cst_62 [0] : vector<4x1xf32> to vector<1xf32>
    %117 = vector.shape_cast %116 : vector<1xf32> to vector<1x1xf32>
    %cst_63 = arith.constant 9.765625E-4 : f32
    %118 = vector.broadcast %cst_63 : f32 to vector<1x1xf32>
    %119 = arith.mulf %117, %118 : vector<1x1xf32>
    %cst_64 = arith.constant 9.99999974E-6 : f32
    %120 = vector.broadcast %cst_64 : f32 to vector<1x1xf32>
    %121 = arith.addf %119, %120 : vector<1x1xf32>
    %122 = math.rsqrt %121 : vector<1x1xf32>
    %123 = vector.shape_cast %122 : vector<1x1xf32> to vector<1x1xf32>
    %124 = vector.broadcast %123 : vector<1x1xf32> to vector<4x1xf32>
    %125 = vector.extract_strided_slice %114 {offsets = [4, 0], sizes = [4, 1], strides = [1, 1]} : vector<8x1xf32> to vector<4x1xf32>
    %cst_65 = arith.constant dense<0.000000e+00> : vector<1xf32>
    %126 = vector.multi_reduction <add>, %125, %cst_65 [0] : vector<4x1xf32> to vector<1xf32>
    %127 = vector.shape_cast %126 : vector<1xf32> to vector<1x1xf32>
    %cst_66 = arith.constant 9.765625E-4 : f32
    %128 = vector.broadcast %cst_66 : f32 to vector<1x1xf32>
    %129 = arith.mulf %127, %128 : vector<1x1xf32>
    %cst_67 = arith.constant 9.99999974E-6 : f32
    %130 = vector.broadcast %cst_67 : f32 to vector<1x1xf32>
    %131 = arith.addf %129, %130 : vector<1x1xf32>
    %132 = math.rsqrt %131 : vector<1x1xf32>
    %133 = vector.shape_cast %132 : vector<1x1xf32> to vector<1x1xf32>
    %134 = vector.broadcast %133 : vector<1x1xf32> to vector<4x1xf32>
    %135 = tpu.concatenate %124, %134 in 0 : vector<4x1xf32>, vector<4x1xf32> -> vector<8x1xf32>
    %136 = arith.mulf %135, %91 : vector<8x1xf32>
    %137 = vector.broadcast %136 : vector<8x1xf32> to vector<8x256xf32>
    %138 = arith.mulf %111, %137 : vector<8x256xf32>
    %139 = vector.broadcast %92 : vector<8x1xf32> to vector<8x256xf32>
    %140 = arith.addf %138, %139 : vector<8x256xf32>
    %cst_68 = arith.constant 5.000000e-01 : f32
    %141 = vector.broadcast %cst_68 : f32 to vector<8x256xf32>
    %142 = arith.mulf %141, %140 : vector<8x256xf32>
    %cst_69 = arith.constant 0.707106769 : f32
    %143 = vector.broadcast %cst_69 : f32 to vector<8x256xf32>
    %144 = arith.mulf %140, %143 : vector<8x256xf32>
    %145 = math.erf %144 : vector<8x256xf32>
    %cst_70 = arith.constant 1.000000e+00 : f32
    %146 = vector.broadcast %cst_70 : f32 to vector<8x256xf32>
    %147 = arith.addf %146, %145 : vector<8x256xf32>
    %148 = arith.mulf %142, %147 : vector<8x256xf32>
    %c0_71 = arith.constant 0 : index
    %c0_72 = arith.constant 0 : index
    %c0_73 = arith.constant 0 : index
    %149 = vector.load %arg6[%c0_71, %c0_72, %c0_73] : memref<1x8x256xf32, #tpu.memory_space<vmem>>, vector<1x8x256xf32>
    %150 = vector.shape_cast %149 : vector<1x8x256xf32> to vector<8x256xf32>
    %151 = vector.shape_cast %148 : vector<8x256xf32> to vector<1x8x256xf32>
    tpu.vector_store %arg6[%c0_71, %c0_72, %c0_73], %151 {strides = array<i32>} : memref<1x8x256xf32, #tpu.memory_space<vmem>>, vector<1x8x256xf32>,
    return
  }
  func.func @transform_0(%arg0: i32) -> (i32, i32, i32) {
    %c0_i32 = arith.constant 0 : i32
    %c0_i32_0 = arith.constant 0 : i32
    %c0_i32_1 = arith.constant 0 : i32
    return %arg0, %c0_i32, %c0_i32_0 : i32, i32, i32
  }
  func.func @transform_1(%arg0: i32) -> (i32, i32, i32) {
    %c0_i32 = arith.constant 0 : i32
    %c0_i32_0 = arith.constant 0 : i32
    %c0_i32_1 = arith.constant 0 : i32
    %c0_i32_2 = arith.constant 0 : i32
    return %c0_i32, %c0_i32_0, %c0_i32_1 : i32, i32, i32
  }
  func.func @transform_2(%arg0: i32) -> (i32, i32) {
    %c0_i32 = arith.constant 0 : i32
    %c0_i32_0 = arith.constant 0 : i32
    %c0_i32_1 = arith.constant 0 : i32
    return %c0_i32, %c0_i32_0 : i32, i32
  }
  func.func @transform_3(%arg0: i32) -> (i32, i32) {
    %c0_i32 = arith.constant 0 : i32
    %c0_i32_0 = arith.constant 0 : i32
    %c0_i32_1 = arith.constant 0 : i32
    return %c0_i32, %c0_i32_0 : i32, i32
  }
  func.func @transform_4(%arg0: i32) -> (i32, i32) {
    %c0_i32 = arith.constant 0 : i32
    %c0_i32_0 = arith.constant 0 : i32
    %c0_i32_1 = arith.constant 0 : i32
    return %c0_i32, %c0_i32_0 : i32, i32
  }
  func.func @transform_5(%arg0: i32) -> (i32, i32, i32) {
    %c0_i32 = arith.constant 0 : i32
    %c0_i32_0 = arith.constant 0 : i32
    %c0_i32_1 = arith.constant 0 : i32
    return %arg0, %c0_i32, %c0_i32_0 : i32, i32, i32
  }
}

</mosaic_0001>

<bundles_post_ra>
// kernel: tpu_custom_call.1
= control target key start
LH: loop header
LB: loop body
LE: loop exit
PB: predicated region body
PF: predicated region fallthrough
CT: control target
= control target key end

     0   :  { %10 = vsyncpa [#allocation4], 0  ;;  %s1820_s0 = inlined_call_operand.vmem [shape: f32[2,4,256], index: 0, kind: input, shape index: {}]   ;;  %s1821_s1 = inlined_call_operand.vmem [shape: f32[9,8,4], index: 1, kind: input, shape index: {}]   ;;  %s1822_s2 = inlined_call_operand.vmem [shape: f32[8,1], index: 2, kind: input, shape index: {}]   ;;  %s1823_s3 = inlined_call_operand.vmem [shape: f32[8,1], index: 3, kind: input, shape index: {}]   ;;  %s1824_s4 = inlined_call_operand.vmem [shape: f32[8,1], index: 4, kind: input, shape index: {}]   ;;  %s1825_s5 = inlined_call_operand.hbm [shape: f32[2,8,256], index: 5, kind: output, shape index: {}]  }
   0x1   :  { %12 = vsyncpa [#allocation4 + $0x1], 0  ;;  %s1573_s18 = smov 0   ;;  %s1575_s19 = smov 0  }
   0x2   :  { %s1577_s20 = smov 0   ;;  %s1579_s21 = smov 0  }
   0x3 LB: > { %s1594_s22 = sadd.s32 4294967295, %s1530_s21   ;;  %s1338_s23 = sadd.s32 4294967294, %s1530_s21   ;;  %s1530_s21 = sphi %s1579_s21, %s1831_s21   ;;  %s1526_s20 = sphi %s1577_s20, %s1830_s20   ;;  %s1522_s19 = sphi %s1575_s19, %s1829_s19   ;;  %s1518_s18 = sphi %s1573_s18, %s1828_s18  }
   0x4   : > { %s1598_s24 = sadd.s32 1, %s1530_s21   ;;  %s135_s25 = sadd.s32 1, %s1526_s20 }
   0x5   : > { %s132_s26 = ssub.s32 %s1530_s21, %s1598_s24  ;;  %p145_p0 = scmp.ne.s32.totalorder %s1526_s20, %s1522_s19 }
   0x6   : > { %p133_p1 = scmp.eq.s32.totalorder %s132_s26, 0  ;;  %p146_p2 = scmp.eq.s32.totalorder %s1594_s22, 1 }
   0x7   : > { %p151_p3 = scmp.ne.s32.totalorder %s1522_s19, %s1518_s18  ;;  %p152_p4 = scmp.eq.s32.totalorder %s1338_s23, 1 }
   0x8   : > { %s1609_s27 = scalar_select %p133_p1, %s1526_s20, %s135_s25  }
   0x9   : > { %p1611_p5 = por %p146_p2, %p145_p0  ;;  %p1615_p6 = por %p152_p4, %p151_p3 }
   0xa   : > { %p1341_p7 = scmp.ge.s32.totalorder %s1530_s21, 1  ;;  %p190_p8 = scmp.lt.s32.totalorder %s1530_s21, 3 }
   0xc   : > { %p191_p9 = pnand %p1341_p7, %p190_p8 }
   0xd   : > { %v227_v0 = vlaneseq (!%p191_p9)  ;;  %v1532_v1 = vmov (!%p191_p9), 0.0   ;;  %p218_p10 = scmp.lt.s32.totalorder (!%p191_p9), %s1594_s22, 1  ;;  %s1533_s10 = smov (!%p191_p9), 1   ;;  %vm299_vm4 = vcmask (!%p191_p9), 1043456   ;;  %vm295_vm5 = vcmask (!%p191_p9), 31744   ;;  %v1364_v21 = vld [vmem:[%s1821_s1 + $0x20] sm:$0xff] (!%p191_p9) }
   0xe   : > { %194 = sbr.rel (%p191_p9) target bundleno = 1153 (0x481), region = 40  ;;  %223 = vst [vmem:[#allocation2] sm:$0xf] (!%p191_p9), %v1532_v1  ;;  %224 = vst [vmem:[#allocation2 + $0xc] sm:$0xf] (!%p191_p9), %v1532_v1  ;;  %754 = vmatprep.mubr.f32.mxu0 (!%p191_p9), %v1532_v1  ;;  %368 = vmatprep.mubr.f32.mxu1 (!%p191_p9), %v1532_v1  ;;  %s1534_s11 = smov (!%p191_p9), 15  }
   0xf   : > { %v228_v2 = vand.u32 (!%p191_p9), 127, %v227_v0  ;;  %s1535_s12 = smov (!%p191_p9), 111   ;;  %s1536_s13 = smov (!%p191_p9), 113   ;;  %vm595_vm6 = vcmask (!%p191_p9), 7168   ;;  %vm274_vm7 = vcmask (!%p191_p9), 908288   ;;  %vm490_vm8 = vcmask (!%p191_p9), 121856  }
  0x10   : > { %s1537_s14 = smov (!%p191_p9), 127   ;;  %s1538_s15 = smov (!%p191_p9), 17   ;;  %vm292_vm9 = vcmask (!%p191_p9), 130048   ;;  %v1349_v48 = vld [vmem:[%s1821_s1 + $0x8] sm:$0xff] (!%p191_p9)  ;;  %vm473_vm10 = vcmask (!%p191_p9), 924672   ;;  %vm578_vm11 = vcmask (!%p191_p9), 1039360  }
  0x11   : > { %v229_v3 = vadd.s32 (!%p191_p9), 128, %v228_v2  ;;  %v234_v4 = vand.u32 (!%p191_p9), 15, %v228_v2  ;;  %s1539_s16 = smov (!%p191_p9), 16   ;;  %s1540_s17 = smov (!%p191_p9), 112   ;;  %vm384_vm12 = vcmask (!%p191_p9), 138240   ;;  %v1541_v0 = vmov (!%p191_p9), 0  }
  0x12   : > { %1456 = vset.pattern.permute.xlu0 (!%p191_p9), %v1541_v0  ;;  %1457 = vset.pattern.permute.xlu1 (!%p191_p9), %v1541_v0  ;;  %vm982_vm13 = vcmask (!%p191_p9), 916480   ;;  %s1542_s25 = smov (!%p191_p9), [#allocation3]  }
  0x13   : > { %v241_v5 = vand.u32 (!%p191_p9), 15, %v229_v3  ;;  %vm260_vm0 = vcmp.ne.s32.totalorder (!%p191_p9), %v234_v4, 15  ;;  %vm254_vm1 = vcmp.ne.s32.totalorder (!%p191_p9), %v234_v4, 0  ;;  %v1168_v4 = vld [vmem:[%s1822_s2] sm:$0xff] (!%p191_p9)  ;;  %s1472_s26 = sshll.u32 (!%p191_p9), %s1542_s25, 4  ;;  %s1473_s26 = int_to_ptr.vmem [resolvable:$false] %s1472_s26 }
  0x14   : > { %v1347_v6 = vsel (!%p191_p9), %vm260_vm0, 1.0, %v1532_v1  ;;  %v1345_v7 = vsel (!%p191_p9), %vm254_vm1, 1.0, %v1532_v1 }
  0x15   : > { %s219_s30 = scalar_select %p218_p10, %s1594_s22, 1  ;;  %vm261_vm2 = vcmp.ne.s32.totalorder %v241_v5, 15  ;;  %vm255_vm3 = vcmp.ne.s32.totalorder %v241_v5, 0  ;;  %v764_v18 = vld [vmem:[#allocation2 + $0xc] sm:$0xf] }
  0x16   : > { %v1348_v8 = vsel %vm261_vm2, 1.0, %v1532_v1  ;;  %v1346_v9 = vsel %vm255_vm3, 1.0, %v1532_v1  ;;  %v867_v26 = vld [vmem:[#allocation2 + $0xc] sm:$0xf] }
  0x17   : > { %s1389_s6 = sshll.u32 %s219_s30, 3  ;;  %v469_v11 = vcombine.low %v1347_v6, %v1348_v8  ;;  %v270_v12 = vcombine.low %v1345_v7, %v1346_v9  ;;  %v970_v52 = vld [vmem:[#allocation2 + $0xc] sm:$0xf]  ;;  %s1474_s30 = scalar_lea.vmem %s1473_s26, 512 }
  0x18   : > { %s222_s9 = scalar_lea.vmem %s1820_s0, %s1389_s6  ;;  %v1066_v2 = vld [vmem:[#allocation2 + $0xc] sm:$0xf] }
  0x19   : > { %v1634_v10 = vld [vmem:[%s222_s9] sm:$0xff]  ;;  %765 = vrot.lane.b32.xlu0 %v469_v11, %s1533_s10  ;;  %868 = vrot.lane.b32.xlu1 %v270_v12, %s1534_s11 }
  0x1a   : > { %226 = vst [vmem:[#allocation2 + $0x4] sm:$0xff] %v1634_v10  ;;  %v975_v16 = vcombine.high %v1634_v10, %v1634_v10 }
  0x1c   : > { %1365 = vmatprep.subr.msk.mxu0 %vm299_vm4, %v975_v16 }
  0x1d   : > { %271 = vrot.lane.b32.xlu0 %v270_v12, %s1535_s12  ;;  %470 = vrot.lane.b32.xlu1 %v469_v11, %s1536_s13 }
  0x1e   : > { %1366 = vmatpush1.msk.msra.mxu0 %vm299_vm4, %v1634_v10 }
  0x1f   : > { %1367 = vmatmul.mubr.msk.f32.vlgmr.msra.gmra.mrb[0].mxu0 %vm295_vm5, %v1364_v21 }
  0x20   : > { %857 = vmatprep.mubr.f32.mxu0 %v1532_v1 }
  0x21   : > { %575 = vrot.lane.b32.xlu0 %v270_v12, %s1537_s14  ;;  %1067 = vrot.lane.b32.xlu1 %v469_v11, %s1538_s15  ;;  %v1643_v13 = vld [vmem:[#allocation2] sm:$0xff]  ;;  %v267_v14 = vld [vmem:[#allocation2 + $0x8] sm:$0xf] }
  0x22   : > { %v285_v15 = vcombine.high %v1643_v13, %v1643_v13  ;;  %v466_v35 = vld [vmem:[#allocation2 + $0x8] sm:$0xf] }
  0x23   : > { %v574_v61 = vld [vmem:[#allocation2 + $0x8] sm:$0xf] }
  0x25   : > { %286 = vrot.lane.b32.xlu0 %v1643_v13, %s1539_s16  ;;  %290 = vrot.lane.b32.xlu1 %v267_v14, %s1539_s16 }
  0x29   : > { %288 = vrot.lane.b32.xlu0 %v285_v15, %s1539_s16 }
  0x2d   : > { %978 = vrot.lane.b32.xlu0 %v975_v16, %s1540_s17  ;;  %v280_v16 = vld [vmem:[%s1821_s1] sm:$0xff] }
  0x8b   : > { %v766_v17 = vpop.permute.xlu0 %765  ;;  %v869_v19 = vpop.permute.xlu1 %868 }
  0x8c   : > { %v767_v20 = vrot.slane %v766_v17, 4  ;;  %v870_v30 = vrot.slane %v869_v19, 4 }
  0x8e   : > { %v772_v22 = vmul.f32 %v767_v20, %v764_v18  ;;  %v768_v24 = vsel %vm595_vm6, %v767_v20, %v766_v17  ;;  %v875_v34 = vmul.f32 %v870_v30, %v867_v26  ;;  %v871_v40 = vsel %vm490_vm8, %v870_v30, %v869_v19  ;;  %v1368_v18 = vld [vmem:[%s1821_s1 + $0x28] sm:$0xff]  ;;  %v1356_v30 = vld [vmem:[%s1821_s1 + $0x10] sm:$0xff] }
  0x8f   : > { %v272_v23 = vpop.permute.xlu0 %271  ;;  %v471_v27 = vpop.permute.xlu1 %470  ;;  %v771_v31 = vmul.f32 %v768_v24, %v1634_v10  ;;  %v874_v43 = vmul.f32 %v871_v40, %v1634_v10 }
  0x90   : > { %v273_v25 = vrot.slane %v272_v23, 4  ;;  %782 = vrot.lane.b32.xlu1 %v772_v22, %s1537_s14  ;;  %v472_v37 = vrot.slane %v471_v27, 4 }
  0x91   : > { %v777_v38 = vcombine.high %v771_v31, %v771_v31  ;;  %v880_v50 = vcombine.high %v874_v43, %v874_v43 }
  0x92   : > { %v275_v28 = vsel %vm274_vm7, %v273_v25, %v272_v23  ;;  %v279_v29 = vmul.f32 %v273_v25, %v267_v14  ;;  %v478_v41 = vmul.f32 %v472_v37, %v466_v35  ;;  %v474_v51 = vsel %vm473_vm10, %v472_v37, %v471_v27  ;;  %v1372_v25 = vld [vmem:[%s1821_s1 + $0x30] sm:$0xff] }
  0x93   : > { %v278_v32 = vmul.f32 %v275_v28, %v1643_v13  ;;  %v576_v33 = vpop.permute.xlu0 %575  ;;  %v1068_v36 = vpop.permute.xlu1 %1067  ;;  %v477_v55 = vmul.f32 %v474_v51, %v1643_v13 }
  0x94   : > { %382 = vrot.lane.b32.xlu1 %v279_v29, %s1538_s15  ;;  %v577_v49 = vrot.slane %v576_v33, 4  ;;  %v1069_v54 = vrot.slane %v1068_v36, 4 }
  0x95   : > { %378 = vrot.lane.b32.xlu0 %v278_v32, %s1538_s15  ;;  %v377_v44 = vcombine.high %v278_v32, %v278_v32  ;;  %v483_v58 = vcombine.high %v477_v55, %v477_v55 }
  0x96   : > { %v579_v53 = vsel %vm578_vm11, %v577_v49, %v576_v33  ;;  %v1070_v57 = vsel %vm384_vm12, %v1069_v54, %v1068_v36  ;;  %v583_v63 = vmul.f32 %v577_v49, %v574_v61  ;;  %v1074_v3 = vmul.f32 %v1069_v54, %v1066_v2  ;;  %v1376_v36 = vld [vmem:[%s1821_s1 + $0x38] sm:$0xff] }
  0x97   : > { %v287_v39 = vpop.permute.xlu0 %286  ;;  %v291_v42 = vpop.permute.xlu1 %290  ;;  %v582_v56 = vmul.f32 %v579_v53, %v1643_v13  ;;  %v1073_v59 = vmul.f32 %v1070_v57, %v1634_v10 }
  0x98   : > { %885 = vrot.lane.b32.xlu1 %v875_v34, %s1536_s13 }
  0x99   : > { %780 = vrot.lane.b32.xlu0 %v777_v38, %s1537_s14  ;;  %v588_v60 = vcombine.high %v582_v56, %v582_v56  ;;  %v1079_v62 = vcombine.high %v1073_v59, %v1073_v59 }
  0x9b   : > { %v289_v45 = vpop.permute.xlu0 %288 }
  0x9c   : > { %488 = vrot.lane.b32.xlu1 %v478_v41, %s1534_s11  ;;  %v294_v46 = vsel %vm292_vm9, %v289_v45, %v291_v42  ;;  %v293_v47 = vsel %vm292_vm9, %v287_v39, %v289_v45  ;;  %v1360_v42 = vld [vmem:[%s1821_s1 + $0x18] sm:$0xff] }
  0x9d   : > { %380 = vrot.lane.b32.xlu0 %v377_v44, %s1538_s15  ;;  %1350 = vmatprep.subr.msk.mxu1 %vm299_vm4, %v294_v46 }
  0x9e   : > { %1351 = vmatpush1.msk.msra.mxu1 %vm299_vm4, %v293_v47 }
  0x9f   : > { %1352 = vmatmul.mubr.msk.f32.vlgmr.msra.gmra.mrb[0].mxu1 %vm295_vm5, %v1349_v48  ;;  %v979_v5 = vpop.permute.xlu0 %978 }
  0xa0   : > { %778 = vrot.lane.b32.xlu1 %v771_v31, %s1537_s14  ;;  %458 = vmatprep.mubr.f32.mxu1 %v1532_v1 }
  0xa1   : > { %883 = vrot.lane.b32.xlu0 %v880_v50, %s1536_s13 }
  0xa4   : > { %980 = vrot.lane.b32.xlu1 %v970_v52, %s1540_s17 }
  0xa5   : > { %484 = vrot.lane.b32.xlu0 %v477_v55, %s1534_s11 }
  0xa8   : > { %881 = vrot.lane.b32.xlu1 %v874_v43, %s1536_s13 }
  0xa9   : > { %486 = vrot.lane.b32.xlu0 %v483_v58, %s1534_s11 }
  0xac   : > { %976 = vrot.lane.b32.xlu1 %v1634_v10, %s1540_s17 }
  0xad   : > { %591 = vrot.lane.b32.xlu0 %v588_v60, %s1533_s10 }
  0xb0   : > { %593 = vrot.lane.b32.xlu1 %v583_v63, %s1533_s10 }
  0xb1   : > { %1082 = vrot.lane.b32.xlu0 %v1079_v62, %s1535_s12 }
  0xb4   : > { %1084 = vrot.lane.b32.xlu1 %v1074_v3, %s1535_s12 }
  0xb5   : > { %589 = vrot.lane.b32.xlu0 %v582_v56, %s1533_s10  ;;  %s215_s10 = sand.u32 1, %s1522_s19  }
  0xb6   : > { %s1342_s11 = sshll.u32 %s215_s10, 4  ;;  %s1265_s23 = scalar_lea.sflag [#allocation4], %s215_s10 }
  0xb7   : > { %s217_s13 = scalar_lea.vmem [#allocation3], %s1342_s11 }
  0xb8   : > { %1080 = vrot.lane.b32.xlu1 %v1073_v59, %s1535_s12  ;;  %s1390_s12 = sshll.u32 %s1594_s22, 8  ;;  %s1279_s14 = sshll.u32 %s217_s13, 4  ;;  %s1780_s14 = int_to_ptr.vmem [resolvable:$true] %s1279_s14 }
  0xb9   : > { %1171 = vperm.xlu0 %1456, %v1168_v4   ;;  %s1778_s17 = scalar_lea.hbm %s1825_s5, %s1390_s12  ;;  %s1468_s22 = scalar_lea.vmem %s1780_s14, 256 }
  0xba   : > { %p1469_p11 = scmp.ne.s32.totalorder %s1780_s14, %s1468_s22  ;;  %p1475_p0 = scmp.lt.s32.totalorder %s1780_s14, %s1473_s26 }
  0xbb   : > { %p1476_p1 = scmp.lt.s32.totalorder %s1474_s30, %s1468_s22 }
  0xbc   : > { %p1470_p12 = pnand %p1469_p11, %p1611_p5 }
  0xbd   : > { %p1477_p2 = por %p1476_p1, %p1475_p0 }
  0xbe   : > { %p1471_p13 = pneg %p1470_p12 }
  0xc0   : > { %p1478_p3 = pnand %p1477_p2, %p1471_p13 }
 0x102   : > { %v783_v6 = vpop.permute.xlu1 %782 }
 0x106   : > { %v383_v7 = vpop.permute.xlu1 %382 }
 0x107   : > { %v379_v8 = vpop.permute.xlu0 %378 }
 0x10a   : > { %v886_v9 = vpop.permute.xlu1 %885 }
 0x10b   : > { %v781_v10 = vpop.permute.xlu0 %780 }
 0x10c   : > { %v785_v11 = vsel %vm578_vm11, %v781_v10, %v783_v6 }
 0x10d   : > { %1369 = vmatprep.subr.msk.mxu0 %vm299_vm4, %v785_v11 }
 0x10e   : > { %v489_v12 = vpop.permute.xlu1 %488 }
 0x10f   : > { %v381_v13 = vpop.permute.xlu0 %380 }
 0x110   : > { %v385_v14 = vsel %vm384_vm12, %v379_v8, %v381_v13  ;;  %v386_v15 = vsel %vm384_vm12, %v381_v13, %v383_v7 }
 0x111   : > { %1353 = vmatprep.subr.msk.mxu1 %vm299_vm4, %v386_v15 }
 0x112   : > { %v779_v17 = vpop.permute.xlu1 %778  ;;  %1354 = vmatpush1.msk.msra.mxu1 %vm299_vm4, %v385_v14 }
 0x113   : > { %v784_v19 = vsel %vm578_vm11, %v779_v17, %v781_v10  ;;  %v884_v20 = vpop.permute.xlu0 %883  ;;  %1355 = vmatmul.mubr.msk.f32.vlgmr.msra.gmra.mrb[0].mxu1 %vm295_vm5, %v280_v16 }
 0x114   : > { %v888_v21 = vsel %vm473_vm10, %v884_v20, %v886_v9  ;;  %1370 = vmatpush1.msk.msra.mxu0 %vm299_vm4, %v784_v19  ;;  %564 = vmatprep.mubr.f32.mxu1 %v1532_v1 }
 0x115   : > { %1371 = vmatmul.mubr.msk.f32.vlgmr.msra.gmra.mrb[0].mxu0 %vm295_vm5, %v1368_v18  ;;  %1373 = vmatprep.subr.msk.mxu0 %vm299_vm4, %v888_v21  ;;  %v1177_v18 = vld [vmem:[%s1824_s4] sm:$0xff] }
 0x116   : > { %v981_v22 = vpop.permute.xlu1 %980  ;;  %960 = vmatprep.mubr.f32.mxu0 %v1532_v1 }
 0x117   : > { %v485_v23 = vpop.permute.xlu0 %484  ;;  %v984_v31 = vsel %vm982_vm13, %v979_v5, %v981_v22 }
 0x11a   : > { %v882_v24 = vpop.permute.xlu1 %881 }
 0x11b   : > { %v887_v26 = vsel %vm473_vm10, %v882_v24, %v884_v20  ;;  %v487_v27 = vpop.permute.xlu0 %486 }
 0x11c   : > { %v491_v28 = vsel %vm490_vm8, %v485_v23, %v487_v27  ;;  %v492_v29 = vsel %vm490_vm8, %v487_v27, %v489_v12  ;;  %1374 = vmatpush1.msk.msra.mxu0 %vm299_vm4, %v887_v26 }
 0x11d   : > { %1357 = vmatprep.subr.msk.mxu1 %vm299_vm4, %v492_v29  ;;  %1375 = vmatmul.mubr.msk.f32.vlgmr.msra.gmra.mrb[0].mxu0 %vm295_vm5, %v1372_v25 }
 0x11e   : > { %1377 = vmatprep.subr.msk.mxu0 %vm299_vm4, %v984_v31  ;;  %v977_v32 = vpop.permute.xlu1 %976  ;;  %1358 = vmatpush1.msk.msra.mxu1 %vm299_vm4, %v491_v28 }
 0x11f   : > { %v983_v33 = vsel %vm982_vm13, %v977_v32, %v979_v5  ;;  %v592_v34 = vpop.permute.xlu0 %591  ;;  %1359 = vmatmul.mubr.msk.f32.vlgmr.msra.gmra.mrb[0].mxu1 %vm295_vm5, %v1356_v30  ;;  %1056 = vmatprep.mubr.f32.mxu0 %v1532_v1 }
 0x120   : > { %1378 = vmatpush1.msk.msra.mxu0 %vm299_vm4, %v983_v33  ;;  %669 = vmatprep.mubr.f32.mxu1 %v1532_v1 }
 0x122   : > { %v594_v35 = vpop.permute.xlu1 %593 }
 0x123   : > { %v597_v37 = vsel %vm595_vm6, %v592_v34, %v594_v35  ;;  %v1083_v38 = vpop.permute.xlu0 %1082 }
 0x124   : > { %1361 = vmatprep.subr.msk.mxu1 %vm299_vm4, %v597_v37 }
 0x125   : > { %1379 = vmatmul.mubr.msk.f32.vlgmr.msra.gmra.mrb[0].mxu0 %vm295_vm5, %v1376_v36 }
 0x126   : > { %v1085_v39 = vpop.permute.xlu1 %1084  ;;  %1159 = vmatprep.mubr.f32.mxu0 %v1532_v1  ;;  %v1380_v1 = vld [vmem:[%s1821_s1 + $0x40] sm:$0xff] }
 0x127   : > { %v1087_v40 = vsel %vm274_vm7, %v1083_v38, %v1085_v39  ;;  %v590_v41 = vpop.permute.xlu0 %589 }
 0x128   : > { %v596_v43 = vsel %vm595_vm6, %v590_v41, %v592_v34  ;;  %1381 = vmatprep.subr.msk.mxu0 %vm299_vm4, %v1087_v40  ;;  %v1176_v40 = vld [vmem:[%s1823_s3] sm:$0xff] }
 0x129   : > { %1362 = vmatpush1.msk.msra.mxu1 %vm299_vm4, %v596_v43 }
 0x12a   : > { %v1081_v44 = vpop.permute.xlu1 %1080  ;;  %1363 = vmatmul.mubr.msk.f32.vlgmr.msra.gmra.mrb[0].mxu1 %vm295_vm5, %v1360_v42 }
 0x12b   : > { %v1086_v45 = vsel %vm274_vm7, %v1081_v44, %v1083_v38 }
 0x12c   : > { %1382 = vmatpush1.msk.msra.mxu0 %vm299_vm4, %v1086_v45 }
 0x12d   : > { %1383 = vmatmul.mubr.msk.f32.vlgmr.msra.gmra.mrb[0].mxu0 %vm295_vm5, %v1380_v1 }
 0x138   : > { %v1172_v49 = vpop.permute.xlu0 %1171 }
 0x1fd   : > { %v671_v46 = vpop.f32.mrb[0].mxu1 }
 0x1fe   : > { %v673_v47 = vpop.f32.mrb[1].mxu1 }
 0x200   : > { %v1161_v48 = vpop.f32.mrb[0].mxu0 }
 0x201   : > { %v1391_v50 = vadd.f32 %v1161_v48, %v671_v46  ;;  %v1163_v51 = vpop.f32.mrb[1].mxu0 }
 0x202   : > { %v1392_v52 = vadd.f32 %v1163_v51, %v673_v47 }
 0x203   : > { %v1174_v53 = vadd.f32 %v1391_v50, %v1172_v49 }
 0x204   : > { %v1175_v54 = vadd.f32 %v1392_v52, %v1172_v49 }
 0x206   : > { %v1178_v55 = vadd.f32 %v1175_v54, %v1174_v53 }
 0x208   : > { %1179 = vadd.xlane.f32.xlu1 %v1178_v55 }
 0x295   : > { %v1180_v56 = vpop.xlane.xlu1 %1179 }
 0x296   : > { %v1181_v57 = vsel %vm299_vm4, %v1180_v56, 0.0  ;;  %v1190_v58 = vrot.slane %v1180_v56, 4 }
 0x297   : > { %v1182_v59 = vrot.slane %v1181_v57, 4 }
 0x298   : > { %v1192_v60 = vsel %vm299_vm4, %v1190_v58, 0.0 }
 0x299   : > { %v1183_v61 = vadd.f32 %v1182_v59, %v1181_v57  ;;  %v1193_v62 = vrot.slane %v1192_v60, 4 }
 0x29b   : > { %v1184_v63 = vrot.slane %v1183_v61, 2  ;;  %v1194_v0 = vadd.f32 %v1193_v62, %v1192_v60 }
 0x29d   : > { %v1185_v2 = vadd.f32 %v1184_v63, %v1183_v61  ;;  %v1195_v3 = vrot.slane %v1194_v0, 2 }
 0x29f   : > { %v1186_v4 = vrot.slane %v1185_v2, 1  ;;  %v1196_v5 = vadd.f32 %v1195_v3, %v1194_v0 }
 0x2a1   : > { %v1187_v6 = vadd.f32 %v1186_v4, %v1185_v2  ;;  %v1197_v7 = vrot.slane %v1196_v5, 1 }
 0x2a3   : > { %v1198_v8 = vadd.f32 %v1197_v7, %v1196_v5  ;;  %v1188_v9 = vmul.f32 0.0009765625, %v1187_v6 }
 0x2a5   : > { %v1199_v10 = vmul.f32 0.0009765625, %v1198_v8 }
 0x2a7   : > { %v1200_v11 = vsel %vm299_vm4, %v1188_v9, %v1199_v10 }
 0x2a8   : > { %1203 = vperm.xlu0 %1456, %v1200_v11  }
 0x327   : > { %v1204_v12 = vpop.permute.xlu0 %1203 }
 0x328   : > { %v1206_v13 = vsub.f32 %v1174_v53, %v1204_v12  ;;  %v1207_v14 = vsub.f32 %v1175_v54, %v1204_v12 }
 0x32a   : > { %v1208_v15 = vmul.f32 %v1206_v13, %v1206_v13  ;;  %v1209_v16 = vmul.f32 %v1207_v14, %v1207_v14 }
 0x32c   : > { %v1210_v17 = vadd.f32 %v1209_v16, %v1208_v15 }
 0x32e   : > { %1211 = vadd.xlane.f32.xlu0 %v1210_v17 }
 0x344   : > { %1247 = vperm.xlu0 %1456, %v1177_v18  }
 0x3bb   : > { %v1212_v19 = vpop.xlane.xlu0 %1211 }
 0x3bc   : > { %v1213_v20 = vsel %vm299_vm4, %v1212_v19, 0.0  ;;  %v1224_v21 = vrot.slane %v1212_v19, 4 }
 0x3bd   : > { %v1214_v22 = vrot.slane %v1213_v20, 4 }
 0x3be   : > { %v1226_v23 = vsel %vm299_vm4, %v1224_v21, 0.0 }
 0x3bf   : > { %v1215_v24 = vadd.f32 %v1214_v22, %v1213_v20  ;;  %v1227_v25 = vrot.slane %v1226_v23, 4 }
 0x3c1   : > { %v1216_v26 = vrot.slane %v1215_v24, 2  ;;  %v1228_v27 = vadd.f32 %v1227_v25, %v1226_v23 }
 0x3c3   : > { %v1217_v28 = vadd.f32 %v1216_v26, %v1215_v24  ;;  %v1229_v29 = vrot.slane %v1228_v27, 2  ;;  %v1248_v46 = vpop.permute.xlu0 %1247 }
 0x3c5   : > { %v1218_v30 = vrot.slane %v1217_v28, 1  ;;  %v1230_v31 = vadd.f32 %v1229_v29, %v1228_v27 }
 0x3c7   : > { %v1219_v32 = vadd.f32 %v1218_v30, %v1217_v28  ;;  %v1231_v33 = vrot.slane %v1230_v31, 1 }
 0x3c9   : > { %v1220_v34 = vmul.f32 0.0009765625, %v1219_v32  ;;  %v1232_v35 = vadd.f32 %v1231_v33, %v1230_v31 }
 0x3cb   : > { %v1221_v36 = vadd.f32 1e-05, %v1220_v34  ;;  %v1233_v37 = vmul.f32 0.0009765625, %v1232_v35 }
 0x3cd   : > { %v1234_v38 = vadd.f32 1e-05, %v1233_v37  ;;  %1460 = vrsqrt.f32 %v1221_v36 }
 0x3cf   : > { %1462 = vrsqrt.f32 %v1234_v38 }
 0x3d7   : > { %v1461_v39 = vpop.eup %1460 }
 0x3d9   : > { %v1463_v41 = vpop.eup %1462 }
 0x3da   : > { %v1236_v42 = vsel %vm299_vm4, %v1461_v39, %v1463_v41 }
 0x3db   : > { %v1237_v43 = vmul.f32 %v1236_v42, %v1176_v40 }
 0x3dd   : > { %1240 = vperm.xlu1 %1457, %v1237_v43  }
 0x45c   : > { %v1241_v44 = vpop.permute.xlu1 %1240 }
 0x45d   : > { %v1243_v1 = vmul.f32 %v1241_v44, %v1206_v13  ;;  %v1244_v45 = vmul.f32 %v1241_v44, %v1207_v14 }
 0x45f   : > { %v1250_v47 = vadd.f32 %v1248_v46, %v1243_v1  ;;  %v1251_v48 = vadd.f32 %v1248_v46, %v1244_v45 }
 0x461   : > { %v1254_v49 = vmul.f32 0.70710677, %v1250_v47  ;;  %v1255_v50 = vmul.f32 0.70710677, %v1251_v48  ;;  %v1252_v53 = vmul.f32 0.5, %v1250_v47  ;;  %v1253_v55 = vmul.f32 0.5, %v1251_v48 }
 0x463   : > { %1464 = verf.f32 %v1254_v49 }
 0x464   : > { %1466 = verf.f32 %v1255_v50 }
 0x46d   : > { %v1465_v51 = vpop.eup %1464 }
 0x46e   : > { %v1467_v52 = vpop.eup %1466  ;;  %v1258_v54 = vadd.f32 1.0, %v1465_v51 }
 0x46f   : > { %v1259_v56 = vadd.f32 1.0, %v1467_v52 }
 0x470   : > { %v1260_v57 = vmul.f32 %v1258_v54, %v1252_v53 }
 0x471   : > { %v1261_v58 = vmul.f32 %v1259_v56, %v1253_v55 }
 0x472   : > { %1262 = vst [vmem:[%s217_s13] sm:$0xff] %v1260_v57 }
 0x473   : > { %1263 = vst [vmem:[%s217_s13 + $0x8] sm:$0xff] %v1261_v58 }
 0x474   : > { %1481 = shalt.err (!%p1478_p3)
}
 0x475   : > { %s1482_s6 = scalar_lea.hbm %s1778_s17, 256  ;;  %s1486_s9 = scalar_lea.hbm %s1825_s5, 512 }
 0x476   : > { %p1483_p4 = scmp.ne.s32.totalorder %s1778_s17, %s1482_s6  ;;  %p1487_p9 = scmp.lt.u32.totalorder %s1778_s17, %s1825_s5 }
 0x477   : > { %p1488_p10 = scmp.lt.u32.totalorder %s1486_s9, %s1482_s6  ;;  %p1490_p12 = scmp.lt.u32.totalorder %s1482_s6, %s1778_s17 }
 0x478   : > { %p1484_p7 = pnand %p1483_p4, %p1611_p5 }
 0x479   : > { %p1489_p11 = por %p1488_p10, %p1487_p9 }
 0x47a   : > { %p1485_p8 = pneg %p1484_p7 }
 0x47b   : > { %p1491_p13 = por %p1490_p12, %p1489_p11 }
 0x47d   : > { %p1492_p0 = pnand %p1491_p13, %p1485_p8 }
 0x47f   : > { %1495 = shalt.err (!%p1492_p0)
}
 0x480   : > { %1407 = dma.vmem_to_hbm [thread:$0]  (%p1611_p5), %s1780_s14, 256, %s1778_s17, %s1265_s23  }
 0x481 PF: > { %p1413_p1 = scmp.ge.s32.totalorder %s1530_s21, 2  ;;  %s1291_s12 = sand.u32 1, %s1518_s18  }
 0x482   : > { %s1292_s13 = scalar_lea.sflag [#allocation4], %s1291_s12 }
 0x483   : > { %p1410_p2 = pnand %p1413_p1, %p1615_p6 }
 0x485   : > { %1513 = dma.done.wait (!%p1410_p2), %s1292_s13, 256  }
 0x486   : > { %1515 = vsyncadd (!%p1410_p2), %s1292_s13, 4294967040  ;;  %p15_p3 = scmp.ge.s32.totalorder %s1598_s24, 4   ;;  %s1828_s18 = smov %s1522_s19 }
 0x487   : > { %s1829_s19 = smov %s1526_s20  ;;  %s1830_s20 = smov %s1609_s27 }
 0x488   : > { %s1831_s21 = smov %s1598_s24  ;;  %17 = sbr.rel (!%p15_p3) target bundleno = 3 (0x3), region = 83 }
 0x48f   :  { %1297 = vsyncpa [#allocation4], 1 }
 0x490   :  { %1299 = vsyncpa [#allocation4 + $0x1], 1 }

</bundles_post_ra>
